<compile_context>
chip_gen: v5e
topology: v5e:2x2
jax: 0.10.0
libtpu: 0.0.40
codegen_flags: <defaults>
</compile_context>

<pallas_src>
import jax
import jax.numpy as jnp
from jax import lax
from jax.experimental import pallas as pl
from jax.experimental.pallas import tpu as pltpu

NEG_SLOPE = 0.2  # LeakyReLU slope used by GAT-style attention


def ac_kernel(x_ref, adj_ref, wlr_ref, att_ref, wh_ref, bh_ref, out_ref):
    B, N, D = x_ref.shape
    H2 = wlr_ref.shape[1]
    H = H2 // 2

    x = x_ref[...]                                   # [B, N, D]  (f32)
    adj = adj_ref[...]                               # [B, N, N]  (f32 mask)

    # --- GATv2 node transforms: one MXU push for Wl and Wr, all graphs ----
    h = jnp.dot(x.reshape(B * N, D), wlr_ref[...],
                preferred_element_type=jnp.float32)  # [B*N, 2H]
    h = h.reshape(B, N, H2)
    hl = h[:, :, :H]                                 # [B, N, H]
    hr = h[:, :, H:]                                 # [B, N, H]

    # --- e_ij = a . LeakyReLU(Wl h_i + Wr h_j), fully batched -------------
    att = att_ref[...].reshape(1, 1, 1, H)           # hoisted broadcast
    s = hl[:, :, None, :] + hr[:, None, :, :]        # [B, N, N, H]
    s = jnp.maximum(s, NEG_SLOPE * s)                # LeakyReLU
    # H=32 < lane width: VPU multiply + cross-lane (XLU) reduce is the
    # cheapest path; an MXU dot against a [H,1] vector would be mostly idle.
    e = jnp.sum(s * att, axis=-1)                    # [B, N, N]

    # --- masked softmax over neighbors j -----------------------------------
    mask = adj > 0.0
    e = jnp.where(mask, e, -1e9)
    e = e - jnp.max(e, axis=-1, keepdims=True)
    p = jnp.where(mask, jnp.exp(e), 0.0)             # isolated rows -> zeros
    denom = jnp.sum(p, axis=-1, keepdims=True)
    alpha = p * pl.reciprocal(denom + 1e-20, approx=True)   # [B, N, N]

    # --- aggregate + mean graph pooling -> graph embedding -----------------
    h_out = lax.dot_general(                          # batched [N,N]x[N,H]
        alpha, hr,
        dimension_numbers=(((2,), (1,)), ((0,), (0,))),
        preferred_element_type=jnp.float32)           # [B, N, H]
    emb = jnp.mean(h_out, axis=1)                     # [B, H]

    # --- fused actor (logits) + critic (value) head: one dot, one store ----
    out_ref[...] = (jnp.dot(emb, wh_ref[...],
                            preferred_element_type=jnp.float32)
                    + bh_ref[...])                    # [B, A+1]


def ac_model_forward(x, adj, params):
    B, N, D = x.shape
    A = params["wa"].shape[1]

    # Fuse weights once on the host side (cheap, outside the kernel).
    wlr = jnp.concatenate([params["wl"], params["wr"]], axis=1)   # [D, 2H]
    wh = jnp.concatenate([params["wa"], params["wc"]], axis=1)    # [H, A+1]
    bh = jnp.concatenate([params["ba"], params["bc"]], axis=1)    # [1, A+1]

    out = pl.pallas_call(
        ac_kernel,
        out_shape=jax.ShapeDtypeStruct((B, A + 1), jnp.float32),
    )(x, adj, wlr, params["att"], wh, bh)

    logits = out[:, :A]                      # actor Categorical logits
    value = out[:, A]                        # matches x.squeeze(1) in torch
    # TODO(synk): torch.distributions.Categorical has no Pallas equivalent;
    # return the logits / log-probs that parameterize the distribution.
    log_probs = jax.nn.log_softmax(logits, axis=-1)
    return logits, log_probs, value


def init_ac_params(key, input_dim, output_dim, hidden=32):
    keys = jax.random.split(key, 5)

    def torch_linear_weight(k, out_f, in_f):
        # init_params: normal(0,1) then row-normalize over the input dim
        w = jax.random.normal(k, (out_f, in_f), jnp.float32)
        w = w / jnp.sqrt(jnp.sum(w * w, axis=1, keepdims=True))
        return w

    wl = torch_linear_weight(keys[0], hidden, input_dim).T      # [D, H]
    wr = torch_linear_weight(keys[1], hidden, input_dim).T      # [D, H]
    att = jax.random.normal(keys[2], (1, hidden), jnp.float32)  # [1, H]
    wa = torch_linear_weight(keys[3], output_dim, hidden).T     # [H, A]
    ba = jnp.zeros((1, output_dim), jnp.float32)
    wc = torch_linear_weight(keys[4], 1, hidden).T              # [H, 1]
    bc = jnp.zeros((1, 1), jnp.float32)
    return dict(wl=wl, wr=wr, att=att, wa=wa, ba=ba, wc=wc, bc=bc)


if __name__ == "__main__":
    key = jax.random.PRNGKey(0)
    B, N, D_in, A = 2, 8, 4, 5          # batch of 2 DFAs, 8 nodes, 5 actions
    k1, k2, k3 = jax.random.split(key, 3)

    x = jax.random.normal(k1, (B, N, D_in), jnp.float32)
    adj = (jax.random.uniform(k2, (B, N, N)) > 0.5).astype(jnp.float32)
    adj = jnp.maximum(adj, jnp.eye(N, dtype=jnp.float32)[None])  # self loops

    params = init_ac_params(k3, D_in, A)
    logits, log_probs, value = ac_model_forward(x, adj, params)
    jax.block_until_ready((logits, log_probs, value))

    assert logits.shape == (B, A) and value.shape == (B,)
    assert bool(jnp.all(jnp.isfinite(logits))) and bool(jnp.all(jnp.isfinite(value)))
    assert bool(jnp.all(jnp.isfinite(log_probs)))
    print("KERNEL_OK")
</pallas_src>

<mosaic_0001>
module attributes {stable_mosaic.version = 11 : i64} {
  func.func @ac_kernel(%arg0: memref<2x8x4xf32, #tpu.memory_space<vmem>>, %arg1: memref<2x8x8xf32, #tpu.memory_space<vmem>>, %arg2: memref<4x64xf32, #tpu.memory_space<vmem>>, %arg3: memref<1x32xf32, #tpu.memory_space<vmem>>, %arg4: memref<32x6xf32, #tpu.memory_space<vmem>>, %arg5: memref<1x6xf32, #tpu.memory_space<vmem>>, %arg6: memref<2x6xf32, #tpu.memory_space<vmem>>) attributes {dimension_semantics = [], scalar_prefetch = 0 : i64, scratch_operands = 0 : i64, tpu.core_type = #tpu.core_type<tc>} {
    %c0 = arith.constant 0 : index
    %c0_0 = arith.constant 0 : index
    %c0_1 = arith.constant 0 : index
    %0 = vector.load %arg0[%c0, %c0_0, %c0_1] : memref<2x8x4xf32, #tpu.memory_space<vmem>>, vector<2x8x4xf32>
    %c0_2 = arith.constant 0 : index
    %c0_3 = arith.constant 0 : index
    %c0_4 = arith.constant 0 : index
    %1 = vector.load %arg1[%c0_2, %c0_3, %c0_4] : memref<2x8x8xf32, #tpu.memory_space<vmem>>, vector<2x8x8xf32>
    %2 = vector.shape_cast %0 : vector<2x8x4xf32> to vector<16x4xf32>
    %c0_5 = arith.constant 0 : index
    %c0_6 = arith.constant 0 : index
    %3 = vector.load %arg2[%c0_5, %c0_6] : memref<4x64xf32, #tpu.memory_space<vmem>>, vector<4x64xf32>
    %cst = arith.constant dense<0.000000e+00> : vector<16x64xf32>
    %4 = tpu.matmul %2, %3, %cst {dimension_numbers = #tpu.dot_dimension_numbers<[1], [0], [0], [1], [0, 0, 1, 1], [], []>} : vector<16x4xf32>, vector<4x64xf32>, vector<16x64xf32> -> vector<16x64xf32>
    %5 = vector.shape_cast %4 : vector<16x64xf32> to vector<2x8x64xf32>
    %6 = vector.extract_strided_slice %5 {offsets = [0, 0, 0], sizes = [2, 8, 32], strides = [1, 1, 1]} : vector<2x8x64xf32> to vector<2x8x32xf32>
    %7 = vector.extract_strided_slice %5 {offsets = [0, 0, 32], sizes = [2, 8, 32], strides = [1, 1, 1]} : vector<2x8x64xf32> to vector<2x8x32xf32>
    %c0_7 = arith.constant 0 : index
    %c0_8 = arith.constant 0 : index
    %8 = vector.load %arg3[%c0_7, %c0_8] : memref<1x32xf32, #tpu.memory_space<vmem>>, vector<1x32xf32>
    %9 = vector.shape_cast %8 : vector<1x32xf32> to vector<1x1x1x32xf32>
    %10 = vector.shape_cast %6 : vector<2x8x32xf32> to vector<2x8x1x32xf32>
    %11 = vector.shape_cast %7 : vector<2x8x32xf32> to vector<2x1x8x32xf32>
    %12 = vector.broadcast %10 : vector<2x8x1x32xf32> to vector<2x8x8x32xf32>
    %13 = vector.broadcast %11 : vector<2x1x8x32xf32> to vector<2x8x8x32xf32>
    %14 = arith.addf %12, %13 : vector<2x8x8x32xf32>
    %cst_9 = arith.constant 2.000000e-01 : f32
    %15 = vector.broadcast %cst_9 : f32 to vector<2x8x8x32xf32>
    %16 = arith.mulf %15, %14 : vector<2x8x8x32xf32>
    %17 = arith.maximumf %14, %16 : vector<2x8x8x32xf32>
    %18 = vector.broadcast %9 : vector<1x1x1x32xf32> to vector<2x8x8x32xf32>
    %19 = arith.mulf %17, %18 : vector<2x8x8x32xf32>
    %cst_10 = arith.constant dense<0.000000e+00> : vector<2x8x8xf32>
    %20 = vector.multi_reduction <add>, %19, %cst_10 [3] : vector<2x8x8x32xf32> to vector<2x8x8xf32>
    %cst_11 = arith.constant 0.000000e+00 : f32
    %21 = vector.broadcast %cst_11 : f32 to vector<2x8x8xf32>
    %22 = arith.cmpf ogt, %1, %21 : vector<2x8x8xf32>
    %cst_12 = arith.constant -1.000000e+09 : f32
    %23 = vector.broadcast %cst_12 : f32 to vector<2x8x8xf32>
    %24 = arith.select %22, %20, %23 : vector<2x8x8xi1>, vector<2x8x8xf32>
    %cst_13 = arith.constant dense<0xFF800000> : vector<2x8xf32>
    %25 = vector.multi_reduction <maximumf>, %24, %cst_13 [2] : vector<2x8x8xf32> to vector<2x8xf32>
    %26 = vector.shape_cast %25 : vector<2x8xf32> to vector<2x8x1xf32>
    %27 = vector.broadcast %26 : vector<2x8x1xf32> to vector<2x8x8xf32>
    %28 = arith.subf %24, %27 : vector<2x8x8xf32>
    %29 = math.exp %28 : vector<2x8x8xf32>
    %cst_14 = arith.constant 0.000000e+00 : f32
    %30 = vector.broadcast %cst_14 : f32 to vector<2x8x8xf32>
    %31 = arith.select %22, %29, %30 : vector<2x8x8xi1>, vector<2x8x8xf32>
    %cst_15 = arith.constant dense<0.000000e+00> : vector<2x8xf32>
    %32 = vector.multi_reduction <add>, %31, %cst_15 [2] : vector<2x8x8xf32> to vector<2x8xf32>
    %33 = vector.shape_cast %32 : vector<2x8xf32> to vector<2x8x1xf32>
    %cst_16 = arith.constant 9.99999968E-21 : f32
    %34 = vector.broadcast %cst_16 : f32 to vector<2x8x1xf32>
    %35 = arith.addf %33, %34 : vector<2x8x1xf32>
    %36 = tpu.reciprocal %35 {approx = true} : vector<2x8x1xf32> -> vector<2x8x1xf32>
    %37 = vector.broadcast %36 : vector<2x8x1xf32> to vector<2x8x8xf32>
    %38 = arith.mulf %31, %37 : vector<2x8x8xf32>
    %cst_17 = arith.constant dense<0.000000e+00> : vector<2x8x32xf32>
    %39 = tpu.matmul %38, %7, %cst_17 {dimension_numbers = #tpu.dot_dimension_numbers<[2], [1], [1], [2], [0, 0, 0, 1, 1, 2], [0], [0]>} : vector<2x8x8xf32>, vector<2x8x32xf32>, vector<2x8x32xf32> -> vector<2x8x32xf32>
    %cst_18 = arith.constant dense<0.000000e+00> : vector<2x32xf32>
    %40 = vector.multi_reduction <add>, %39, %cst_18 [1] : vector<2x8x32xf32> to vector<2x32xf32>
    %cst_19 = arith.constant 8.000000e+00 : f32
    %41 = vector.broadcast %cst_19 : f32 to vector<2x32xf32>
    %42 = arith.divf %40, %41 : vector<2x32xf32>
    %c0_20 = arith.constant 0 : index
    %c0_21 = arith.constant 0 : index
    %43 = vector.load %arg4[%c0_20, %c0_21] : memref<32x6xf32, #tpu.memory_space<vmem>>, vector<32x6xf32>
    %cst_22 = arith.constant dense<0.000000e+00> : vector<2x6xf32>
    %44 = tpu.matmul %42, %43, %cst_22 {dimension_numbers = #tpu.dot_dimension_numbers<[1], [0], [0], [1], [0, 0, 1, 1], [], []>} : vector<2x32xf32>, vector<32x6xf32>, vector<2x6xf32> -> vector<2x6xf32>
    %c0_23 = arith.constant 0 : index
    %c0_24 = arith.constant 0 : index
    %45 = vector.load %arg5[%c0_23, %c0_24] : memref<1x6xf32, #tpu.memory_space<vmem>>, vector<1x6xf32>
    %46 = vector.broadcast %45 : vector<1x6xf32> to vector<2x6xf32>
    %47 = arith.addf %44, %46 : vector<2x6xf32>
    %c0_25 = arith.constant 0 : index
    %c0_26 = arith.constant 0 : index
    %48 = vector.load %arg6[%c0_25, %c0_26] : memref<2x6xf32, #tpu.memory_space<vmem>>, vector<2x6xf32>
    tpu.vector_store %arg6[%c0_25, %c0_26], %47 {strides = array<i32>} : memref<2x6xf32, #tpu.memory_space<vmem>>, vector<2x6xf32>,
    return
  }
}

</mosaic_0001>

<bundles_post_ra>
// kernel: tpu_custom_call.1
= control target key start
LH: loop header
LB: loop body
LE: loop exit
PB: predicated region body
PF: predicated region fallthrough
CT: control target
= control target key end

     0   :  { %vm36_vm0 = vcmask 1043456   ;;  %vm29_vm1 = vcmask 31744   ;;  %s669_s0 = inlined_call_operand.vmem [shape: f32[2,8,4], index: 0, kind: input, shape index: {}]   ;;  %s670_s1 = inlined_call_operand.vmem [shape: f32[2,8,8], index: 1, kind: input, shape index: {}]   ;;  %s671_s2 = inlined_call_operand.vmem [shape: f32[4,64], index: 2, kind: input, shape index: {}]   ;;  %s672_s3 = inlined_call_operand.vmem [shape: f32[1,32], index: 3, kind: input, shape index: {}]   ;;  %s673_s4 = inlined_call_operand.vmem [shape: f32[32,6], index: 4, kind: input, shape index: {}]   ;;  %s674_s5 = inlined_call_operand.vmem [shape: f32[1,6], index: 5, kind: input, shape index: {}]   ;;  %s675_s6 = inlined_call_operand.hbm [shape: f32[2,6], index: 6, kind: output, shape index: {}]  }
   0x1   :  { %v28_v0 = vld [vmem:[%s671_s2] sm:$0xf] }
   0x2   :  { %v24_v1 = vld [vmem:[%s669_s0] sm:$0xff]  ;;  %442 = vmatpush.msk.msra.mxu0 %vm36_vm0, %v28_v0 }
   0x3   :  { %11 = vsyncpa [#allocation3], 0  ;;  %443 = vmatmul.msk.f32.vlgmr.msra.gmra.mxu0 %vm29_vm1, %v24_v1  ;;  %v25_v2 = vld [vmem:[%s669_s0 + $0x8] sm:$0xff]  ;;  %s489_s27 = smov 96   ;;  %v556_v18 = vld [vmem:[%s672_s3] ss:$0 sm:$0xff] }
   0x4   :  { %vm185_vm2 = vcmask 261120   ;;  %vm270_vm3 = vcmask 1041409   ;;  %vm272_vm4 = vcmask 1042434   ;;  %vm274_vm5 = vcmask 1043459   ;;  %s491_s15 = smov [#allocation2]   ;;  %s433_s19 = sshll.u32 %s675_s6, 4  ;;  %s434_s19 = int_to_ptr.hbm [resolvable:$true] %s433_s19 }
   0x5   :  { %vm276_vm6 = vcmask 1044484   ;;  %vm278_vm7 = vcmask 1045509   ;;  %vm280_vm8 = vcmask 1046534   ;;  %vm282_vm9 = vcmask 1047559   ;;  %s431_s16 = sshll.u32 %s491_s15, 4  ;;  %s432_s16 = int_to_ptr.vmem [resolvable:$true] %s431_s16 }
   0x6   :  { %vm295_vm11 = vcmask 64512   ;;  %vm424_vm14 = vcmask 41984  }
   0xb   :  { %444 = vmatmul.msk.f32.gmra.mxu0 %vm29_vm1, %v25_v2 }
  0x80   :  { %v536_v3 = vpop.f32.mrf.mxu0 }
  0x81   :  { %v66_v24 = vrot.slane %v536_v3, 1  ;;  %v80_v35 = vperm.slane %v536_v3, 0  ;;  %v68_v43 = vrot.slane %v536_v3, 3  ;;  %v67_v44 = vrot.slane %v536_v3, 2 }
  0x82   :  { %v70_v57 = vrot.slane %v536_v3, 5  ;;  %v69_v58 = vrot.slane %v536_v3, 4 }
  0x83   :  { %v81_v34 = vperm.slane %v66_v24, 0  ;;  %v83_v49 = vperm.slane %v68_v43, 0  ;;  %v82_v50 = vperm.slane %v67_v44, 0 }
  0x84   :  { %v85_v63 = vperm.slane %v70_v57, 0  ;;  %v84_v0 = vperm.slane %v69_v58, 0 }
  0x88   :  { %v538_v4 = vpop.f32.mrf.mxu0 }
  0x89   :  { %114 = vrot.lane.b32.xlu0 %v538_v4, %s489_s27  ;;  %v76_v5 = vrot.slane %v538_v4, 4  ;;  %v74_v6 = vrot.slane %v538_v4, 2  ;;  %v75_v7 = vrot.slane %v538_v4, 3  ;;  %v73_v8 = vrot.slane %v538_v4, 1 }
  0x8a   :  { %v88_v9 = vperm.slane %v538_v4, 0 }
  0x8b   :  { %v92_v10 = vperm.slane %v76_v5, 0  ;;  %v90_v11 = vperm.slane %v74_v6, 0  ;;  %v91_v13 = vperm.slane %v75_v7, 0  ;;  %v89_v14 = vperm.slane %v73_v8, 0 }
  0x91   :  { %112 = vrot.lane.b32.xlu0 %v536_v3, %s489_s27 }
  0xfb   :  { %v547_v12 = vpop.permute.xlu0 %114 }
  0xfc   :  { %363 = vmatpush.msra.mxu2 %v547_v12  ;;  %v126_v15 = vadd.f32 %v547_v12, %v88_v9  ;;  %v130_v16 = vadd.f32 %v547_v12, %v92_v10  ;;  %v128_v17 = vadd.f32 %v547_v12, %v90_v11  ;;  %v129_v19 = vadd.f32 %v547_v12, %v91_v13 }
  0xfd   :  { %v127_v20 = vadd.f32 %v547_v12, %v89_v14  ;;  %v77_v9 = vrot.slane %v538_v4, 5  ;;  %v78_v10 = vrot.slane %v538_v4, 6 }
  0xfe   :  { %v142_v21 = vmul.f32 0.2, %v126_v15  ;;  %v146_v22 = vmul.f32 0.2, %v130_v16  ;;  %v144_v23 = vmul.f32 0.2, %v128_v17 }
  0xff   :  { %v143_v28 = vmul.f32 0.2, %v127_v20  ;;  %v145_v29 = vmul.f32 0.2, %v129_v19 }
 0x100   :  { %v158_v25 = vmax.f32 %v126_v15, %v142_v21  ;;  %v162_v26 = vmax.f32 %v130_v16, %v146_v22  ;;  %v160_v27 = vmax.f32 %v128_v17, %v144_v23  ;;  %v93_v16 = vperm.slane %v77_v9, 0 }
 0x101   :  { %v159_v39 = vmax.f32 %v127_v20, %v143_v28  ;;  %v161_v40 = vmax.f32 %v129_v19, %v145_v29  ;;  %v94_v17 = vperm.slane %v78_v10, 0 }
 0x102   :  { %v177_v30 = vmul.f32 %v556_v18, %v158_v25  ;;  %v181_v31 = vmul.f32 %v556_v18, %v162_v26  ;;  %v179_v32 = vmul.f32 %v556_v18, %v160_v27  ;;  %v131_v21 = vadd.f32 %v547_v12, %v93_v16 }
 0x103   :  { %v564_v33 = vpop.permute.xlu0 %112  ;;  %v178_v45 = vmul.f32 %v556_v18, %v159_v39  ;;  %v180_v47 = vmul.f32 %v556_v18, %v161_v40  ;;  %v132_v24 = vadd.f32 %v547_v12, %v94_v17  ;;  %v79_v25 = vrot.slane %v538_v4, 7 }
 0x104   :  { %340 = vmatpush.msra.mxu1 %v564_v33  ;;  %v210_v36 = vsel %vm185_vm2, %v177_v30, 0.0  ;;  %v222_v37 = vsel %vm185_vm2, %v181_v31, 0.0  ;;  %v216_v38 = vsel %vm185_vm2, %v179_v32, 0.0  ;;  %v119_v41 = vadd.f32 %v564_v33, %v81_v34 }
 0x105   :  { %211 = vadd.xlane.f32.xlu1 %v210_v36  ;;  %223 = vadd.xlane.f32.xlu0 %v222_v37  ;;  %v118_v42 = vadd.f32 %v564_v33, %v80_v35  ;;  %v213_v51 = vsel %vm185_vm2, %v178_v45, 0.0  ;;  %v121_v53 = vadd.f32 %v564_v33, %v83_v49  ;;  %v219_v54 = vsel %vm185_vm2, %v180_v47, 0.0 }
 0x106   :  { %217 = vadd.xlane.f32.xlu2 %v216_v38  ;;  %v135_v48 = vmul.f32 0.2, %v119_v41  ;;  %v120_v56 = vadd.f32 %v564_v33, %v82_v50  ;;  %v123_v5 = vadd.f32 %v564_v33, %v85_v63  ;;  %v122_v8 = vadd.f32 %v564_v33, %v84_v0 }
 0x107   :  { %v134_v46 = vmul.f32 0.2, %v118_v42  ;;  %v137_v60 = vmul.f32 0.2, %v121_v53  ;;  %v71_v26 = vrot.slane %v536_v3, 6  ;;  %v95_v31 = vperm.slane %v79_v25, 0 }
 0x108   :  { %v151_v55 = vmax.f32 %v119_v41, %v135_v48  ;;  %v136_v62 = vmul.f32 0.2, %v120_v56  ;;  %v139_v13 = vmul.f32 0.2, %v123_v5  ;;  %v138_v15 = vmul.f32 0.2, %v122_v8 }
 0x109   :  { %v150_v52 = vmax.f32 %v118_v42, %v134_v46  ;;  %v153_v2 = vmax.f32 %v121_v53, %v137_v60  ;;  %v147_v28 = vmul.f32 0.2, %v131_v21  ;;  %v148_v30 = vmul.f32 0.2, %v132_v24 }
 0x10a   :  { %v170_v61 = vmul.f32 %v556_v18, %v151_v55  ;;  %v152_v7 = vmax.f32 %v120_v56, %v136_v62  ;;  %v155_v20 = vmax.f32 %v123_v5, %v139_v13  ;;  %v154_v23 = vmax.f32 %v122_v8, %v138_v15 }
 0x10b   :  { %v169_v59 = vmul.f32 %v556_v18, %v150_v52  ;;  %v172_v11 = vmul.f32 %v556_v18, %v153_v2  ;;  %v86_v32 = vperm.slane %v71_v26, 0  ;;  %v163_v35 = vmax.f32 %v131_v21, %v147_v28 }
 0x10c   :  { %v189_v6 = vsel %vm185_vm2, %v170_v61, 0.0  ;;  %v171_v14 = vmul.f32 %v556_v18, %v152_v7  ;;  %v174_v27 = vmul.f32 %v556_v18, %v155_v20  ;;  %v173_v29 = vmul.f32 %v556_v18, %v154_v23  ;;  %v27_v23 = vld [vmem:[%s670_s1 + $0x8] sm:$0xff] }
 0x10d   :  { %214 = vadd.xlane.f32.xlu1 %v213_v51  ;;  %v186_v1 = vsel %vm185_vm2, %v169_v59, 0.0  ;;  %v195_v19 = vsel %vm185_vm2, %v172_v11, 0.0  ;;  %v133_v36 = vadd.f32 %v547_v12, %v95_v31  ;;  %v164_v38 = vmax.f32 %v132_v24, %v148_v30 }
 0x10e   :  { %220 = vadd.xlane.f32.xlu2 %v219_v54  ;;  %v192_v22 = vsel %vm185_vm2, %v171_v14, 0.0  ;;  %v201_v34 = vsel %vm185_vm2, %v174_v27, 0.0  ;;  %v198_v37 = vsel %vm185_vm2, %v173_v29, 0.0  ;;  %v124_v4 = vadd.f32 %v564_v33, %v86_v32 }
 0x10f   :  { %v72_v39 = vrot.slane %v536_v3, 7  ;;  %v182_v40 = vmul.f32 %v556_v18, %v163_v35  ;;  %v149_v41 = vmul.f32 0.2, %v133_v36  ;;  %v183_v42 = vmul.f32 %v556_v18, %v164_v38 }
 0x110   :  { %v140_v43 = vmul.f32 0.2, %v124_v4  ;;  %v252_v63 = vlaneseq  ;;  %vm235_vm10 = vcmp.gt.f32.partialorder %v27_v23, 0.0 }
 0x111   :  { %v87_v44 = vperm.slane %v72_v39, 0  ;;  %v225_v45 = vsel %vm185_vm2, %v182_v40, 0.0  ;;  %v165_v46 = vmax.f32 %v133_v36, %v149_v41  ;;  %v228_v47 = vsel %vm185_vm2, %v183_v42, 0.0  ;;  %v26_v40 = vld [vmem:[%s670_s1] sm:$0xff] }
 0x112   :  { %v156_v48 = vmax.f32 %v124_v4, %v140_v43  ;;  %v253_v0 = vand.u32 127, %v252_v63  ;;  %vm234_vm12 = vcmp.gt.f32.partialorder %v26_v40, 0.0 }
 0x113   :  { %v125_v12 = vadd.f32 %v564_v33, %v87_v44  ;;  %v184_v49 = vmul.f32 %v556_v18, %v165_v46 }
 0x114   :  { %v175_v50 = vmul.f32 %v556_v18, %v156_v48 }
 0x115   :  { %187 = vadd.xlane.f32.xlu1 %v186_v1  ;;  %v141_v3 = vmul.f32 0.2, %v125_v12  ;;  %v231_v51 = vsel %vm185_vm2, %v184_v49, 0.0 }
 0x116   :  { %190 = vadd.xlane.f32.xlu2 %v189_v6  ;;  %v204_v53 = vsel %vm185_vm2, %v175_v50, 0.0 }
 0x117   :  { %v157_v52 = vmax.f32 %v125_v12, %v141_v3 }
 0x119   :  { %v176_v54 = vmul.f32 %v556_v18, %v157_v52 }
 0x11b   :  { %v207_v33 = vsel %vm185_vm2, %v176_v54, 0.0 }
 0x11d   :  { %196 = vadd.xlane.f32.xlu1 %v195_v19 }
 0x11e   :  { %193 = vadd.xlane.f32.xlu2 %v192_v22 }
 0x125   :  { %202 = vadd.xlane.f32.xlu1 %v201_v34 }
 0x126   :  { %199 = vadd.xlane.f32.xlu2 %v198_v37 }
 0x12d   :  { %226 = vadd.xlane.f32.xlu1 %v225_v45 }
 0x12e   :  { %229 = vadd.xlane.f32.xlu2 %v228_v47 }
 0x135   :  { %232 = vadd.xlane.f32.xlu1 %v231_v51 }
 0x136   :  { %205 = vadd.xlane.f32.xlu2 %v204_v53 }
 0x13d   :  { %208 = vadd.xlane.f32.xlu1 %v207_v33 }
 0x178   :  { %v212_v55 = vpop.xlane.xlu1 %211  ;;  %v224_v10 = vpop.xlane.xlu0 %223 }
 0x179   :  { %v218_v56 = vpop.xlane.xlu2 %217  ;;  %v262_v6 = vperm.slane %v212_v55, %v253_v0  ;;  %v266_v16 = vperm.slane %v224_v10, %v253_v0 }
 0x17a   :  { %v264_v7 = vperm.slane %v218_v56, %v253_v0 }
 0x180   :  { %v215_v57 = vpop.xlane.xlu1 %214 }
 0x181   :  { %v221_v58 = vpop.xlane.xlu2 %220  ;;  %v263_v2 = vperm.slane %v215_v57, %v253_v0 }
 0x182   :  { %v265_v11 = vperm.slane %v221_v58, %v253_v0 }
 0x183   :  { %v284_v18 = vsel %vm270_vm3, %v263_v2, %v262_v6  ;;  %v393_v2 = vld [vmem:[%s673_s4 + $0x10] sm:$0xff]  ;;  %v391_v6 = vld [vmem:[%s673_s4] sm:$0xff] }
 0x184   :  { %v285_v8 = vsel %vm272_vm4, %v264_v7, %v284_v18  ;;  %v490_v18 = vmov 8.0  }
 0x185   :  { %v286_v14 = vsel %vm274_vm5, %v265_v11, %v285_v8 }
 0x186   :  { %v287_v22 = vsel %vm276_vm6, %v266_v16, %v286_v14 }
 0x188   :  { %v188_v59 = vpop.xlane.xlu1 %187 }
 0x189   :  { %v191_v60 = vpop.xlane.xlu2 %190  ;;  %v254_v19 = vperm.slane %v188_v59, %v253_v0 }
 0x18a   :  { %v255_v17 = vperm.slane %v191_v60, %v253_v0 }
 0x18c   :  { %v271_v26 = vsel %vm270_vm3, %v255_v17, %v254_v19 }
 0x190   :  { %v197_v61 = vpop.xlane.xlu1 %196 }
 0x191   :  { %v194_v62 = vpop.xlane.xlu2 %193  ;;  %v257_v27 = vperm.slane %v197_v61, %v253_v0 }
 0x192   :  { %v256_v20 = vperm.slane %v194_v62, %v253_v0 }
 0x194   :  { %v273_v29 = vsel %vm272_vm4, %v256_v20, %v271_v26 }
 0x195   :  { %v275_v36 = vsel %vm274_vm5, %v257_v27, %v273_v29 }
 0x198   :  { %v203_v1 = vpop.xlane.xlu1 %202 }
 0x199   :  { %v200_v5 = vpop.xlane.xlu2 %199  ;;  %v259_v37 = vperm.slane %v203_v1, %v253_v0  ;;  %v394_v1 = vld [vmem:[%s673_s4 + $0x18] sm:$0xff] }
 0x19a   :  { %v258_v30 = vperm.slane %v200_v5, %v253_v0  ;;  %416 = vmatpush.msra.mxu3 %v394_v1  ;;  %v392_v5 = vld [vmem:[%s673_s4 + $0x8] sm:$0xff] }
 0x19c   :  { %v277_v4 = vsel %vm276_vm6, %v258_v30, %v275_v36  ;;  %417 = vmatpush.msra.mxu3 %v393_v2 }
 0x19d   :  { %v279_v42 = vsel %vm278_vm7, %v259_v37, %v277_v4 }
 0x19e   :  { %418 = vmatpush.msra.mxu3 %v392_v5 }
 0x1a0   :  { %v227_v9 = vpop.xlane.xlu1 %226  ;;  %419 = vmatpush.msra.mxu3 %v391_v6 }
 0x1a1   :  { %v230_v13 = vpop.xlane.xlu2 %229  ;;  %v267_v15 = vperm.slane %v227_v9, %v253_v0 }
 0x1a2   :  { %v268_v21 = vperm.slane %v230_v13, %v253_v0 }
 0x1a3   :  { %v288_v24 = vsel %vm278_vm7, %v267_v15, %v287_v22 }
 0x1a4   :  { %v289_v31 = vsel %vm280_vm8, %v268_v21, %v288_v24 }
 0x1a8   :  { %v233_v25 = vpop.xlane.xlu1 %232 }
 0x1a9   :  { %v269_v28 = vperm.slane %v233_v25, %v253_v0  ;;  %v206_v32 = vpop.xlane.xlu2 %205 }
 0x1aa   :  { %v260_v39 = vperm.slane %v206_v32, %v253_v0 }
 0x1ab   :  { %v290_v34 = vsel %vm282_vm9, %v269_v28, %v289_v31 }
 0x1ac   :  { %v294_v35 = vsel %vm235_vm10, %v290_v34, -1e+09  ;;  %v281_v44 = vsel %vm280_vm8, %v260_v39, %v279_v42 }
 0x1ad   :  { %v299_v38 = vsel %vm295_vm11, %v294_v35, -inf }
 0x1ae   :  { %300 = vmax.xlane.f32.xlu2 %v299_v38 }
 0x1b0   :  { %v209_v41 = vpop.xlane.xlu1 %208 }
 0x1b1   :  { %v261_v43 = vperm.slane %v209_v41, %v253_v0 }
 0x1b3   :  { %v283_v45 = vsel %vm282_vm9, %v261_v43, %v281_v44 }
 0x1b4   :  { %v293_v46 = vsel %vm234_vm12, %v283_v45, -1e+09 }
 0x1b5   :  { %v296_v12 = vsel %vm295_vm11, %v293_v46, -inf }
 0x1b6   :  { %297 = vmax.xlane.f32.xlu0 %v296_v12 }
 0x221   :  { %v301_v47 = vpop.xlane.xlu2 %300 }
 0x222   :  { %v303_v48 = vsub.f32 %v294_v35, %v301_v47  ;;  %v452_v35 = vld [vmem:[%s674_s5] ss:$0 sm:$0xff] }
 0x224   :  { %v306_v49 = vmul.f32 1.442695, %v303_v48 }
 0x226   :  { %453 = vpow2.f32 %v306_v49 }
 0x229   :  { %v298_v3 = vpop.xlane.xlu0 %297 }
 0x22a   :  { %v302_v50 = vsub.f32 %v293_v46, %v298_v3 }
 0x22c   :  { %v454_v51 = vpop.eup %453  ;;  %v304_v52 = vmul.f32 1.442695, %v302_v50 }
 0x22d   :  { %v309_v53 = vsel %vm235_vm10, %v454_v51, 0.0 }
 0x22e   :  { %455 = vpow2.f32 %v304_v52  ;;  %v313_v54 = vsel %vm295_vm11, %v309_v53, 0.0 }
 0x22f   :  { %314 = vadd.xlane.f32.xlu1 %v313_v54 }
 0x234   :  { %v456_v33 = vpop.eup %455 }
 0x235   :  { %v308_v55 = vsel %vm234_vm12, %v456_v33, 0.0 }
 0x236   :  { %v310_v56 = vsel %vm295_vm11, %v308_v55, 0.0 }
 0x237   :  { %311 = vadd.xlane.f32.xlu2 %v310_v56 }
 0x2a2   :  { %v315_v57 = vpop.xlane.xlu1 %314 }
 0x2a3   :  { %v317_v58 = vadd.f32 1e-20, %v315_v57 }
 0x2a5   :  { %457 = vrcp.f32 %v317_v58 }
 0x2aa   :  { %v312_v59 = vpop.xlane.xlu2 %311 }
 0x2ab   :  { %v458_v60 = vpop.eup %457  ;;  %v316_v61 = vadd.f32 1e-20, %v312_v59 }
 0x2ac   :  { %v321_v62 = vmul.f32 %v458_v60, %v309_v53 }
 0x2ad   :  { %459 = vrcp.f32 %v316_v61 }
 0x2ae   :  { %446 = vmatmul.msk.f32.vlgmr.msra.gmra.mxu2 %vm295_vm11, %v321_v62  ;;  %461 = vrcp.f32 %v490_v18 }
 0x2b3   :  { %v460_v63 = vpop.eup %459 }
 0x2b4   :  { %v320_v0 = vmul.f32 %v460_v63, %v308_v55  ;;  %v462_v7 = vpop.eup %461 }
 0x2b5   :  { %v383_v8 = vmul.f32 8.0, %v462_v7  ;;  %vm387_vm13 = vweird.f32 %v462_v7 }
 0x2b6   :  { %445 = vmatmul.msk.f32.vlgmr.msra.gmra.mxu1 %vm295_vm11, %v320_v0 }
 0x2b7   :  { %v384_v11 = vsub.f32 1.0, %v383_v8 }
 0x2b9   :  { %v385_v19 = vmul.f32 %v462_v7, %v384_v11 }
 0x2bb   :  { %v386_v24 = vadd.f32 %v462_v7, %v385_v19 }
 0x2bd   :  { %v388_v29 = vsel %vm387_vm13, %v462_v7, %v386_v24 }
 0x331   :  { %v365_v9 = vpop.f32.mrf.mxu2 }
 0x332   :  { %v375_v10 = vsel %vm185_vm2, %v365_v9, 0.0 }
 0x333   :  { %v376_v13 = vrot.slane %v375_v10, 4  ;;  %v342_v14 = vpop.f32.mrf.mxu1 }
 0x334   :  { %v368_v15 = vsel %vm185_vm2, %v342_v14, 0.0 }
 0x335   :  { %v377_v16 = vadd.f32 %v376_v13, %v375_v10  ;;  %v369_v17 = vrot.slane %v368_v15, 4 }
 0x337   :  { %v378_v20 = vrot.slane %v377_v16, 2  ;;  %v370_v21 = vadd.f32 %v369_v17, %v368_v15 }
 0x339   :  { %v379_v22 = vadd.f32 %v378_v20, %v377_v16  ;;  %v371_v23 = vrot.slane %v370_v21, 2 }
 0x33b   :  { %v380_v25 = vrot.slane %v379_v22, 1  ;;  %v372_v26 = vadd.f32 %v371_v23, %v370_v21 }
 0x33d   :  { %v381_v27 = vadd.f32 %v380_v25, %v379_v22  ;;  %v373_v28 = vrot.slane %v372_v26, 1 }
 0x33f   :  { %v374_v30 = vadd.f32 %v373_v28, %v372_v26  ;;  %v390_v32 = vmul.f32 %v388_v29, %v381_v27 }
 0x341   :  { %v389_v31 = vmul.f32 %v388_v29, %v374_v30 }
 0x343   :  { %v401_v34 = vsel %vm270_vm3, %v390_v32, %v389_v31 }
 0x344   :  { %447 = vmatmul.msk.f32.vlgmr.msra.gmra.mxu3 %vm185_vm2, %v401_v34 }
 0x3c7   :  { %v421_v36 = vpop.f32.mrf.mxu3 }
 0x3c8   :  { %v422_v37 = vadd.f32 %v452_v35, %v421_v36 }
 0x3ca   :  { %425 = vst.msk [vmem:[#allocation2] sm:$0x3] %vm424_vm14, %v422_v37 }
 0x3cb   :  { %436 = dma.vmem_to_hbm [thread:$0]  %s432_s16, 32, %s434_s19, [#allocation3]  }
 0x3cc   :  { %487 = dma.done.wait [#allocation3], 32  }
 0x3cd   :  { %488 = vsyncadd [#allocation3], 4294967264 }
 0x3ce   :  { %441 = vsyncpa [#allocation3], 1 }

</bundles_post_ra>
